<compile_context>
chip_gen: v6e
topology: v6e:2x2x1
jax: 0.10.0
libtpu: 0.0.40
codegen_flags: <defaults>
</compile_context>

<pallas_src>
import numpy as np
import jax
import jax.numpy as jnp
from jax.experimental import pallas as pl
from jax.experimental.pallas import tpu as pltpu

# ---- static problem sizes (small, consistent with the module) ----
B = 2
INPUT_DIM = 16            # L
HIDDEN_DIM = 32           # H
K = 5                     # conv kernel size
PAD = 2                   # conv padding
C1 = 16                   # conv1 out channels
C2 = 32                   # conv2 out channels
L = INPUT_DIM
L_POOL = L // 2           # length after MaxPool1d(2) = 8


def cnn1d_kernel(x_ref, w1_ref, b1_ref, w2_ref, b2_ref, wf_ref, bf_ref, o_ref):
    """Whole forward pass in a single grid-less invocation.

    x_ref : (B, L)        input
    w1_ref: (L, L*C1)     conv1 Toeplitz weight  (lane = m*C1 + c)
    b1_ref: (1, L*C1)     conv1 bias broadcast over positions
    w2_ref: (L*C1, L*C2)  conv2 Toeplitz weight  (lane = l*C2 + o)
    b2_ref: (1, L*C2)     conv2 bias broadcast over positions
    wf_ref: (L*C2, H)     fused MaxPool-select + Flatten + Linear weight
    bf_ref: (1, H)        fc bias
    o_ref : (B, H)        output
    """
    f32 = jnp.float32
    # Conv1d(1->16, k5, p2) + ReLU : one MXU matmul (zero padding is baked into
    # the Toeplitz weight as zero rows).
    h1 = jnp.maximum(
        jnp.dot(x_ref[...], w1_ref[...], preferred_element_type=f32)
        + b1_ref[...], 0.0)                                    # (B, L*C1)
    # Conv1d(16->32, k5, p2) + ReLU : one MXU matmul.
    h2 = jnp.maximum(
        jnp.dot(h1, w2_ref[...], preferred_element_type=f32)
        + b2_ref[...], 0.0)                                    # (B, L*C2)
    # MaxPool1d(2): align position block l+1 with block l using one lane
    # rotation (shift (L-1)*C2 == -C2 mod L*C2, jnp.roll semantics) and take
    # the elementwise max; even-l blocks then hold the pooled result.
    nxt = pltpu.roll(h2, shift=(L - 1) * C2, axis=1)           # nxt[:, l*C2+o] = h2[:, (l+1)*C2+o]
    pooled = jnp.maximum(h2, nxt)                              # (B, L*C2)
    # Flatten + Linear + ReLU : one MXU matmul; wf has zero rows for the odd-l
    # (junk) blocks so they contribute nothing.
    o_ref[...] = jnp.maximum(
        jnp.dot(pooled, wf_ref[...], preferred_element_type=f32)
        + bf_ref[...], 0.0)


def pack_params(w1, b1, w2, b2, wfc, bfc):
    """One-time (outside the jitted forward) repack of the PyTorch-layout
    parameters into the Toeplitz / fused layouts consumed by the kernel."""
    w1 = np.asarray(w1); b1 = np.asarray(b1)
    w2 = np.asarray(w2); b2 = np.asarray(b2)
    wfc = np.asarray(wfc); bfc = np.asarray(bfc)

    # conv1: h1[b, m*C1 + c] = sum_q x[b, q] * w1t[q, m*C1 + c] + b1[c]
    w1t = np.zeros((L, L * C1), np.float32)
    for m in range(L):
        for k in range(K):
            q = m + k - PAD                         # input position feeding output m
            if 0 <= q < L:
                w1t[q, m * C1:(m + 1) * C1] = w1[:, 0, k]
    b1r = np.tile(b1.astype(np.float32), L)[None, :]            # (1, L*C1)

    # conv2: h2[b, l*C2 + o] = sum_{m,c} h1[b, m*C1 + c] * w2t[m*C1+c, l*C2+o] + b2[o]
    w2t = np.zeros((L * C1, L * C2), np.float32)
    for l in range(L):
        for k in range(K):
            m = l + k - PAD
            if 0 <= m < L:
                w2t[m * C1:(m + 1) * C1, l * C2:(l + 1) * C2] = w2[:, :, k].T  # [c, o]
    b2r = np.tile(b2.astype(np.float32), L)[None, :]            # (1, L*C2)

    # MaxPool(2) + Flatten + Linear: only even position blocks l = 2j carry
    # weight; rows l*C2 + o -> wfc[:, o*L_POOL + j]  (PyTorch flatten is
    # channel-major).  Odd blocks stay zero -> junk lanes are discarded for free.
    wft = np.zeros((L * C2, HIDDEN_DIM), np.float32)
    for j in range(L_POOL):
        l = 2 * j
        wft[l * C2:(l + 1) * C2, :] = wfc[:, j::L_POOL].T       # (C2, H)
    bfr = bfc.astype(np.float32)[None, :]                       # (1, H)

    return tuple(jnp.asarray(a) for a in (w1t, b1r, w2t, b2r, wft, bfr))


def cnn1d_forward(x, w1t, b1r, w2t, b2r, wft, bfr):
    """x: (B, INPUT_DIM) f32 -> (B, HIDDEN_DIM) f32, single pallas_call."""
    vmem = pl.BlockSpec(memory_space=pltpu.MemorySpace.VMEM)
    return pl.pallas_call(
        cnn1d_kernel,
        out_shape=jax.ShapeDtypeStruct((x.shape[0], HIDDEN_DIM), jnp.float32),
        in_specs=[vmem] * 7,
        out_specs=vmem,
    )(x, w1t, b1r, w2t, b2r, wft, bfr)


def ref_forward(x, w1, b1, w2, b2, wfc, bfc):
    """Pure-JAX reference with PyTorch semantics (NCL, cross-correlation)."""
    Bn, Lx = x.shape
    xp = jnp.pad(x, ((0, 0), (PAD, PAD)))
    cols1 = jnp.stack([xp[:, k:k + Lx] for k in range(K)], axis=1)      # (B,K,L)
    h1 = jnp.einsum('ck,bkl->bcl', w1[:, 0, :], cols1) + b1[None, :, None]
    h1 = jnp.maximum(h1, 0.0)
    h1p = jnp.pad(h1, ((0, 0), (0, 0), (PAD, PAD)))
    cols2 = jnp.stack([h1p[:, :, k:k + Lx] for k in range(K)], axis=2)  # (B,C,K,L)
    h2 = jnp.einsum('ock,bckl->bol', w2, cols2) + b2[None, :, None]
    h2 = jnp.maximum(h2, 0.0)
    pooled = jnp.max(h2.reshape(Bn, C2, Lx // 2, 2), axis=-1)           # (B,C2,L/2)
    flat = pooled.reshape(Bn, -1)                                       # (B, C2*L/2)
    return jnp.maximum(flat @ wfc.T + bfc[None, :], 0.0)


if __name__ == "__main__":
    key = jax.random.PRNGKey(0)
    ks = jax.random.split(key, 7)
    w1 = jax.random.normal(ks[0], (C1, 1, K), jnp.float32) * 0.1
    b1 = jax.random.normal(ks[1], (C1,), jnp.float32) * 0.1
    w2 = jax.random.normal(ks[2], (C2, C1, K), jnp.float32) * 0.1
    b2 = jax.random.normal(ks[3], (C2,), jnp.float32) * 0.1
    wfc = jax.random.normal(ks[4], (HIDDEN_DIM, C2 * L_POOL), jnp.float32) * 0.05
    bfc = jax.random.normal(ks[5], (HIDDEN_DIM,), jnp.float32) * 0.1
    x = jax.random.normal(ks[6], (B, INPUT_DIM), jnp.float32)

    # Weight repacking is done ONCE, outside the per-call jitted path.
    packed = pack_params(w1, b1, w2, b2, wfc, bfc)

    fwd = jax.jit(cnn1d_forward)
    out = fwd(x, *packed)
    out = jax.block_until_ready(out)

    ref = ref_forward(x, w1, b1, w2, b2, wfc, bfc)
    np.testing.assert_allclose(np.asarray(out), np.asarray(ref),
                               rtol=1e-5, atol=1e-5)
    print("KERNEL_OK")
</pallas_src>

<mosaic_0001>
module attributes {stable_mosaic.version = 11 : i64} {
  func.func @cnn1d_kernel(%arg0: memref<2x16xf32, #tpu.memory_space<vmem>>, %arg1: memref<16x256xf32, #tpu.memory_space<vmem>>, %arg2: memref<1x256xf32, #tpu.memory_space<vmem>>, %arg3: memref<256x512xf32, #tpu.memory_space<vmem>>, %arg4: memref<1x512xf32, #tpu.memory_space<vmem>>, %arg5: memref<512x32xf32, #tpu.memory_space<vmem>>, %arg6: memref<1x32xf32, #tpu.memory_space<vmem>>, %arg7: memref<2x32xf32, #tpu.memory_space<vmem>>) attributes {dimension_semantics = [], scalar_prefetch = 0 : i64, scratch_operands = 0 : i64, tpu.core_type = #tpu.core_type<tc>} {
    %c0 = arith.constant 0 : index
    %c0_0 = arith.constant 0 : index
    %0 = vector.load %arg0[%c0, %c0_0] : memref<2x16xf32, #tpu.memory_space<vmem>>, vector<2x16xf32>
    %c0_1 = arith.constant 0 : index
    %c0_2 = arith.constant 0 : index
    %1 = vector.load %arg1[%c0_1, %c0_2] : memref<16x256xf32, #tpu.memory_space<vmem>>, vector<16x256xf32>
    %cst = arith.constant dense<0.000000e+00> : vector<2x256xf32>
    %2 = tpu.matmul %0, %1, %cst {dimension_numbers = #tpu.dot_dimension_numbers<[1], [0], [0], [1], [0, 0, 1, 1], [], []>} : vector<2x16xf32>, vector<16x256xf32>, vector<2x256xf32> -> vector<2x256xf32>
    %c0_3 = arith.constant 0 : index
    %c0_4 = arith.constant 0 : index
    %3 = vector.load %arg2[%c0_3, %c0_4] : memref<1x256xf32, #tpu.memory_space<vmem>>, vector<1x256xf32>
    %4 = vector.broadcast %3 : vector<1x256xf32> to vector<2x256xf32>
    %5 = arith.addf %2, %4 : vector<2x256xf32>
    %cst_5 = arith.constant 0.000000e+00 : f32
    %6 = vector.broadcast %cst_5 : f32 to vector<2x256xf32>
    %7 = arith.maximumf %5, %6 : vector<2x256xf32>
    %c0_6 = arith.constant 0 : index
    %c0_7 = arith.constant 0 : index
    %8 = vector.load %arg3[%c0_6, %c0_7] : memref<256x512xf32, #tpu.memory_space<vmem>>, vector<256x512xf32>
    %cst_8 = arith.constant dense<0.000000e+00> : vector<2x512xf32>
    %9 = tpu.matmul %7, %8, %cst_8 {dimension_numbers = #tpu.dot_dimension_numbers<[1], [0], [0], [1], [0, 0, 1, 1], [], []>} : vector<2x256xf32>, vector<256x512xf32>, vector<2x512xf32> -> vector<2x512xf32>
    %c0_9 = arith.constant 0 : index
    %c0_10 = arith.constant 0 : index
    %10 = vector.load %arg4[%c0_9, %c0_10] : memref<1x512xf32, #tpu.memory_space<vmem>>, vector<1x512xf32>
    %11 = vector.broadcast %10 : vector<1x512xf32> to vector<2x512xf32>
    %12 = arith.addf %9, %11 : vector<2x512xf32>
    %cst_11 = arith.constant 0.000000e+00 : f32
    %13 = vector.broadcast %cst_11 : f32 to vector<2x512xf32>
    %14 = arith.maximumf %12, %13 : vector<2x512xf32>
    %c480_i32 = arith.constant 480 : i32
    %15 = tpu.dynamic_rotate %14 by %c480_i32 dim 1 : vector<2x512xf32>, i32 -> vector<2x512xf32>
    %16 = arith.maximumf %14, %15 : vector<2x512xf32>
    %c0_12 = arith.constant 0 : index
    %c0_13 = arith.constant 0 : index
    %17 = vector.load %arg5[%c0_12, %c0_13] : memref<512x32xf32, #tpu.memory_space<vmem>>, vector<512x32xf32>
    %cst_14 = arith.constant dense<0.000000e+00> : vector<2x32xf32>
    %18 = tpu.matmul %16, %17, %cst_14 {dimension_numbers = #tpu.dot_dimension_numbers<[1], [0], [0], [1], [0, 0, 1, 1], [], []>} : vector<2x512xf32>, vector<512x32xf32>, vector<2x32xf32> -> vector<2x32xf32>
    %c0_15 = arith.constant 0 : index
    %c0_16 = arith.constant 0 : index
    %19 = vector.load %arg6[%c0_15, %c0_16] : memref<1x32xf32, #tpu.memory_space<vmem>>, vector<1x32xf32>
    %20 = vector.broadcast %19 : vector<1x32xf32> to vector<2x32xf32>
    %21 = arith.addf %18, %20 : vector<2x32xf32>
    %cst_17 = arith.constant 0.000000e+00 : f32
    %22 = vector.broadcast %cst_17 : f32 to vector<2x32xf32>
    %23 = arith.maximumf %21, %22 : vector<2x32xf32>
    %c0_18 = arith.constant 0 : index
    %c0_19 = arith.constant 0 : index
    %24 = vector.load %arg7[%c0_18, %c0_19] : memref<2x32xf32, #tpu.memory_space<vmem>>, vector<2x32xf32>
    tpu.vector_store %arg7[%c0_18, %c0_19], %23 {strides = array<i32>} : memref<2x32xf32, #tpu.memory_space<vmem>>, vector<2x32xf32>,
    return
  }
}

</mosaic_0001>

<bundles_post_ra>
// kernel: cnn1d_forward.1
= control target key start
LH: loop header
LB: loop body
LE: loop exit
PB: predicated region body
PF: predicated region fallthrough
CT: control target
= control target key end

     0   :  { %12 = vsyncpa [#allocation3], 0  ;;  %s1095_s0 = inlined_call_operand.vmem [shape: f32[2,16], index: 0, kind: input, shape index: {}]   ;;  %s1096_s1 = inlined_call_operand.vmem [shape: f32[16,256], index: 1, kind: input, shape index: {}]   ;;  %s1097_s2 = inlined_call_operand.vmem [shape: f32[1,256], index: 2, kind: input, shape index: {}]   ;;  %s1098_s3 = inlined_call_operand.hbm [shape: f32[256,512], index: 3, kind: input, shape index: {}]   ;;  %s1099_s4 = inlined_call_operand.vmem [shape: f32[1,512], index: 4, kind: input, shape index: {}]   ;;  %s1100_s5 = inlined_call_operand.vmem [shape: f32[512,32], index: 5, kind: input, shape index: {}]   ;;  %s1101_s6 = inlined_call_operand.vmem [shape: f32[1,32], index: 6, kind: input, shape index: {}]   ;;  %s1102_s7 = inlined_call_operand.hbm [shape: f32[2,32], index: 7, kind: output, shape index: {}]  }
   0x1   :  { %13 = vsyncpa [#allocation4], 0  ;;  %s811_s24 = smov [#allocation2]  }
   0x2   :  { %s25_s25 = sshll.u32 %s811_s24, 4  ;;  %s26_s25 = int_to_ptr.vmem [resolvable:$true] %s25_s25 }
   0x3   :  { %s775_s26 = scalar_lea.vmem %s26_s25, 16384  ;;  %p780_p1 = scmp.lt.s32.totalorder %s26_s25, %s26_s25 }
   0x4   :  { %p776_p0 = scmp.ne.s32.totalorder %s26_s25, %s775_s26  ;;  %p781_p2 = scmp.lt.s32.totalorder %s775_s26, %s775_s26 }
   0x6   :  { %p782_p3 = por %p781_p2, %p780_p1 }
   0x8   :  { %p783_p4 = pnand %p782_p3, %p776_p0 }
   0xa   :  { %786 = shalt.err (!%p783_p4)
}
   0xb   :  { %s812_s27 = smov 512   ;;  %s813_s28 = smov 32  }
   0xc   :  { %31 = dma.hbm_to_vmem [thread:$0]  %s1098_s3, 16384, %s26_s25, [#allocation3], %s812_s27, %s812_s27, %s813_s28  }
   0xd   :  { %807 = dma.done.wait [#allocation3], 16384  }
   0xe   :  { %808 = vsyncadd [#allocation3], 4294950912  ;;  %v814_v0 = vmov 0.0   ;;  %v45_v1 = vld [vmem:[%s1096_s1 + $0x18] sm:$0xff]  ;;  %v44_v2 = vld [vmem:[%s1096_s1 + $0x10] sm:$0xff]  ;;  %vm58_vm0 = vcmask 130048  }
   0xf   :  { %126 = vmatprep.mubr.f32.mxu0 %v814_v0  ;;  %v43_v3 = vld [vmem:[%s1096_s1 + $0x8] sm:$0xff]  ;;  %90 = vmatprep.subr.mxu0 %v45_v1  ;;  %v42_v4 = vld [vmem:[%s1096_s1] sm:$0xff]  ;;  %v198_v7 = vld [vmem:[#allocation2 + $0x1f8] sm:$0xff]  ;;  %s815_s13 = smov 96   ;;  %s816_s15 = smov [#allocation5]   ;;  %vm662_vm2 = vcmask 254976  }
  0x10   :  { %v196_v5 = vld [vmem:[#allocation2 + $0x1e8] sm:$0xff]  ;;  %91 = vmatpush1.msra.mxu0 %v44_v2  ;;  %v41_v6 = vld [vmem:[%s1095_s0] sm:$0x3]  ;;  %v197_v9 = vld [vmem:[#allocation2 + $0x1f0] sm:$0xff]  ;;  %s670_s3 = sshll.u32 %s816_s15, 4  ;;  %s671_s3 = int_to_ptr.vmem [resolvable:$true] %s670_s3 }
  0x11   :  { %285 = vmatprep.subr.mxu1 %v196_v5  ;;  %v195_v8 = vld [vmem:[#allocation2 + $0x1e0] sm:$0xff]  ;;  %92 = vmatprep.subr.mxu0 %v43_v3  ;;  %v192_v10 = vld [vmem:[#allocation2 + $0x1c8] sm:$0xff]  ;;  %v194_v12 = vld [vmem:[#allocation2 + $0x1d8] sm:$0xff]  ;;  %s787_s16 = scalar_lea.vmem %s671_s3, 32  ;;  %p792_p6 = scmp.lt.s32.totalorder %s671_s3, %s671_s3 }
  0x12   :  { %286 = vmatpush1.msra.mxu1 %v195_v8  ;;  %v191_v11 = vld [vmem:[#allocation2 + $0x1c0] sm:$0xff]  ;;  %93 = vmatpush1.msra.mxu0 %v42_v4  ;;  %v188_v13 = vld [vmem:[#allocation2 + $0x1a8] sm:$0xff]  ;;  %v193_v14 = vld [vmem:[#allocation2 + $0x1d0] sm:$0xff]  ;;  %p788_p5 = scmp.ne.s32.totalorder %s671_s3, %s787_s16  ;;  %p793_p7 = scmp.lt.s32.totalorder %s787_s16, %s787_s16 }
  0x13   :  { %287 = vmatprep.subr.mxu1 %v192_v10  ;;  %679 = vmatmul.mubr.msk.f32.vlgmr.msra.gmra.mxu0 %vm58_vm0, %v41_v6  ;;  %v187_v15 = vld [vmem:[#allocation2 + $0x1a0] sm:$0xff]  ;;  %v190_v16 = vld [vmem:[#allocation2 + $0x1b8] sm:$0xff]  ;;  %v184_v17 = vld [vmem:[#allocation2 + $0x188] sm:$0xff] }
  0x14   :  { %356 = vmatprep.subr.mxu0 %v198_v7  ;;  %288 = vmatpush1.msra.mxu1 %v191_v11  ;;  %v189_v18 = vld [vmem:[#allocation2 + $0x1b0] sm:$0xff]  ;;  %v183_v19 = vld [vmem:[#allocation2 + $0x180] sm:$0xff]  ;;  %v186_v20 = vld [vmem:[#allocation2 + $0x198] sm:$0xff]  ;;  %p794_p8 = por %p793_p7, %p792_p6 }
  0x15   :  { %357 = vmatpush1.msra.mxu0 %v197_v9  ;;  %289 = vmatprep.subr.mxu1 %v188_v13  ;;  %v180_v21 = vld [vmem:[#allocation2 + $0x168] sm:$0xff]  ;;  %v185_v22 = vld [vmem:[#allocation2 + $0x190] sm:$0xff]  ;;  %v179_v23 = vld [vmem:[#allocation2 + $0x160] sm:$0xff] }
  0x16   :  { %358 = vmatprep.subr.mxu0 %v194_v12  ;;  %290 = vmatpush1.msra.mxu1 %v187_v15  ;;  %v182_v24 = vld [vmem:[#allocation2 + $0x178] sm:$0xff]  ;;  %v176_v25 = vld [vmem:[#allocation2 + $0x148] sm:$0xff]  ;;  %v181_v26 = vld [vmem:[#allocation2 + $0x170] sm:$0xff]  ;;  %p795_p9 = pnand %p794_p8, %p788_p5 }
  0x17   :  { %359 = vmatpush1.msra.mxu0 %v193_v14  ;;  %291 = vmatprep.subr.mxu1 %v184_v17  ;;  %v175_v27 = vld [vmem:[#allocation2 + $0x140] sm:$0xff]  ;;  %v178_v28 = vld [vmem:[#allocation2 + $0x158] sm:$0xff]  ;;  %v172_v29 = vld [vmem:[#allocation2 + $0x128] sm:$0xff] }
  0x18   :  { %360 = vmatprep.subr.mxu0 %v190_v16  ;;  %292 = vmatpush1.msra.mxu1 %v183_v19  ;;  %v177_v30 = vld [vmem:[#allocation2 + $0x150] sm:$0xff]  ;;  %v171_v31 = vld [vmem:[#allocation2 + $0x120] sm:$0xff]  ;;  %v174_v32 = vld [vmem:[#allocation2 + $0x138] sm:$0xff] }
  0x19   :  { %361 = vmatpush1.msra.mxu0 %v189_v18  ;;  %293 = vmatprep.subr.mxu1 %v180_v21  ;;  %v168_v33 = vld [vmem:[#allocation2 + $0x108] sm:$0xff]  ;;  %v173_v34 = vld [vmem:[#allocation2 + $0x130] sm:$0xff]  ;;  %v167_v35 = vld [vmem:[#allocation2 + $0x100] sm:$0xff] }
  0x1a   :  { %362 = vmatprep.subr.mxu0 %v186_v20  ;;  %294 = vmatpush1.msra.mxu1 %v179_v23  ;;  %v170_v36 = vld [vmem:[#allocation2 + $0x118] sm:$0xff]  ;;  %v164_v37 = vld [vmem:[#allocation2 + $0xe8] sm:$0xff]  ;;  %v169_v38 = vld [vmem:[#allocation2 + $0x110] sm:$0xff] }
  0x1b   :  { %363 = vmatpush1.msra.mxu0 %v185_v22  ;;  %295 = vmatprep.subr.mxu1 %v176_v25  ;;  %v163_v39 = vld [vmem:[#allocation2 + $0xe0] sm:$0xff]  ;;  %v166_v40 = vld [vmem:[#allocation2 + $0xf8] sm:$0xff]  ;;  %v160_v41 = vld [vmem:[#allocation2 + $0xc8] sm:$0xff] }
  0x1c   :  { %364 = vmatprep.subr.mxu0 %v182_v24  ;;  %296 = vmatpush1.msra.mxu1 %v175_v27  ;;  %v165_v42 = vld [vmem:[#allocation2 + $0xf0] sm:$0xff]  ;;  %v159_v43 = vld [vmem:[#allocation2 + $0xc0] sm:$0xff]  ;;  %v162_v44 = vld [vmem:[#allocation2 + $0xd8] sm:$0xff] }
  0x1d   :  { %365 = vmatpush1.msra.mxu0 %v181_v26  ;;  %297 = vmatprep.subr.mxu1 %v172_v29  ;;  %v156_v45 = vld [vmem:[#allocation2 + $0xa8] sm:$0xff]  ;;  %v161_v46 = vld [vmem:[#allocation2 + $0xd0] sm:$0xff]  ;;  %v155_v47 = vld [vmem:[#allocation2 + $0xa0] sm:$0xff] }
  0x1e   :  { %366 = vmatprep.subr.mxu0 %v178_v28  ;;  %298 = vmatpush1.msra.mxu1 %v171_v31  ;;  %v158_v48 = vld [vmem:[#allocation2 + $0xb8] sm:$0xff]  ;;  %v152_v49 = vld [vmem:[#allocation2 + $0x88] sm:$0xff]  ;;  %v157_v50 = vld [vmem:[#allocation2 + $0xb0] sm:$0xff] }
  0x1f   :  { %367 = vmatpush1.msra.mxu0 %v177_v30  ;;  %299 = vmatprep.subr.mxu1 %v168_v33  ;;  %v151_v51 = vld [vmem:[#allocation2 + $0x80] sm:$0xff]  ;;  %v154_v52 = vld [vmem:[#allocation2 + $0x98] sm:$0xff]  ;;  %v148_v53 = vld [vmem:[#allocation2 + $0x68] sm:$0xff] }
  0x20   :  { %368 = vmatprep.subr.mxu0 %v174_v32  ;;  %300 = vmatpush1.msra.mxu1 %v167_v35  ;;  %v153_v54 = vld [vmem:[#allocation2 + $0x90] sm:$0xff]  ;;  %v147_v55 = vld [vmem:[#allocation2 + $0x60] sm:$0xff]  ;;  %v150_v56 = vld [vmem:[#allocation2 + $0x78] sm:$0xff] }
  0x21   :  { %369 = vmatpush1.msra.mxu0 %v173_v34  ;;  %301 = vmatprep.subr.mxu1 %v164_v37  ;;  %v144_v57 = vld [vmem:[#allocation2 + $0x48] sm:$0xff]  ;;  %v149_v58 = vld [vmem:[#allocation2 + $0x70] sm:$0xff]  ;;  %v143_v59 = vld [vmem:[#allocation2 + $0x40] sm:$0xff] }
  0x22   :  { %370 = vmatprep.subr.mxu0 %v170_v36  ;;  %302 = vmatpush1.msra.mxu1 %v163_v39  ;;  %v146_v60 = vld [vmem:[#allocation2 + $0x58] sm:$0xff]  ;;  %v140_v61 = vld [vmem:[#allocation2 + $0x28] sm:$0xff]  ;;  %v145_v62 = vld [vmem:[#allocation2 + $0x50] sm:$0xff] }
  0x23   :  { %371 = vmatpush1.msra.mxu0 %v169_v38  ;;  %303 = vmatprep.subr.mxu1 %v160_v41  ;;  %v139_v63 = vld [vmem:[#allocation2 + $0x20] sm:$0xff]  ;;  %v142_v0 = vld [vmem:[#allocation2 + $0x38] sm:$0xff]  ;;  %v136_v1 = vld [vmem:[#allocation2 + $0x8] sm:$0xff] }
  0x24   :  { %372 = vmatprep.subr.mxu0 %v166_v40  ;;  %304 = vmatpush1.msra.mxu1 %v159_v43  ;;  %v141_v2 = vld [vmem:[#allocation2 + $0x30] sm:$0xff]  ;;  %v135_v3 = vld [vmem:[#allocation2] sm:$0xff]  ;;  %v138_v4 = vld [vmem:[#allocation2 + $0x18] sm:$0xff] }
  0x25   :  { %373 = vmatpush1.msra.mxu0 %v165_v42  ;;  %305 = vmatprep.subr.mxu1 %v156_v45  ;;  %v260_v5 = vld [vmem:[#allocation2 + $0x3e8] sm:$0xff]  ;;  %v137_v6 = vld [vmem:[#allocation2 + $0x10] sm:$0xff]  ;;  %v259_v7 = vld [vmem:[#allocation2 + $0x3e0] sm:$0xff] }
  0x26   :  { %374 = vmatprep.subr.mxu0 %v162_v44  ;;  %306 = vmatpush1.msra.mxu1 %v155_v47  ;;  %v262_v8 = vld [vmem:[#allocation2 + $0x3f8] sm:$0xff]  ;;  %v256_v9 = vld [vmem:[#allocation2 + $0x3c8] sm:$0xff]  ;;  %v261_v10 = vld [vmem:[#allocation2 + $0x3f0] sm:$0xff] }
  0x27   :  { %375 = vmatpush1.msra.mxu0 %v161_v46  ;;  %307 = vmatprep.subr.mxu1 %v152_v49  ;;  %v255_v11 = vld [vmem:[#allocation2 + $0x3c0] sm:$0xff]  ;;  %v258_v12 = vld [vmem:[#allocation2 + $0x3d8] sm:$0xff]  ;;  %v252_v13 = vld [vmem:[#allocation2 + $0x3a8] sm:$0xff] }
  0x28   :  { %376 = vmatprep.subr.mxu0 %v158_v48  ;;  %308 = vmatpush1.msra.mxu1 %v151_v51  ;;  %v257_v14 = vld [vmem:[#allocation2 + $0x3d0] sm:$0xff]  ;;  %v251_v15 = vld [vmem:[#allocation2 + $0x3a0] sm:$0xff]  ;;  %v254_v16 = vld [vmem:[#allocation2 + $0x3b8] sm:$0xff] }
  0x29   :  { %377 = vmatpush1.msra.mxu0 %v157_v50  ;;  %309 = vmatprep.subr.mxu1 %v148_v53  ;;  %v248_v17 = vld [vmem:[#allocation2 + $0x388] sm:$0xff]  ;;  %v253_v18 = vld [vmem:[#allocation2 + $0x3b0] sm:$0xff]  ;;  %v247_v19 = vld [vmem:[#allocation2 + $0x380] sm:$0xff] }
  0x2a   :  { %378 = vmatprep.subr.mxu0 %v154_v52  ;;  %310 = vmatpush1.msra.mxu1 %v147_v55  ;;  %v250_v20 = vld [vmem:[#allocation2 + $0x398] sm:$0xff]  ;;  %v244_v21 = vld [vmem:[#allocation2 + $0x368] sm:$0xff]  ;;  %v249_v22 = vld [vmem:[#allocation2 + $0x390] sm:$0xff] }
  0x2b   :  { %379 = vmatpush1.msra.mxu0 %v153_v54  ;;  %311 = vmatprep.subr.mxu1 %v144_v57  ;;  %v243_v23 = vld [vmem:[#allocation2 + $0x360] sm:$0xff]  ;;  %v246_v24 = vld [vmem:[#allocation2 + $0x378] sm:$0xff]  ;;  %v240_v25 = vld [vmem:[#allocation2 + $0x348] sm:$0xff] }
  0x2c   :  { %380 = vmatprep.subr.mxu0 %v150_v56  ;;  %312 = vmatpush1.msra.mxu1 %v143_v59  ;;  %v245_v26 = vld [vmem:[#allocation2 + $0x370] sm:$0xff]  ;;  %v239_v27 = vld [vmem:[#allocation2 + $0x340] sm:$0xff]  ;;  %v242_v28 = vld [vmem:[#allocation2 + $0x358] sm:$0xff] }
  0x2d   :  { %381 = vmatpush1.msra.mxu0 %v149_v58  ;;  %313 = vmatprep.subr.mxu1 %v140_v61  ;;  %v236_v29 = vld [vmem:[#allocation2 + $0x328] sm:$0xff]  ;;  %v241_v30 = vld [vmem:[#allocation2 + $0x350] sm:$0xff]  ;;  %v235_v31 = vld [vmem:[#allocation2 + $0x320] sm:$0xff] }
  0x2e   :  { %382 = vmatprep.subr.mxu0 %v146_v60  ;;  %314 = vmatpush1.msra.mxu1 %v139_v63  ;;  %v238_v32 = vld [vmem:[#allocation2 + $0x338] sm:$0xff]  ;;  %v232_v33 = vld [vmem:[#allocation2 + $0x308] sm:$0xff]  ;;  %v237_v34 = vld [vmem:[#allocation2 + $0x330] sm:$0xff] }
  0x2f   :  { %383 = vmatpush1.msra.mxu0 %v145_v62  ;;  %315 = vmatprep.subr.mxu1 %v136_v1  ;;  %v231_v35 = vld [vmem:[#allocation2 + $0x300] sm:$0xff]  ;;  %v234_v36 = vld [vmem:[#allocation2 + $0x318] sm:$0xff]  ;;  %v228_v37 = vld [vmem:[#allocation2 + $0x2e8] sm:$0xff] }
  0x30   :  { %384 = vmatprep.subr.mxu0 %v142_v0  ;;  %316 = vmatpush1.msra.mxu1 %v135_v3  ;;  %v233_v38 = vld [vmem:[#allocation2 + $0x310] sm:$0xff]  ;;  %v227_v39 = vld [vmem:[#allocation2 + $0x2e0] sm:$0xff]  ;;  %v230_v40 = vld [vmem:[#allocation2 + $0x2f8] sm:$0xff] }
  0x31   :  { %385 = vmatpush1.msra.mxu0 %v141_v2  ;;  %317 = vmatprep.subr.mxu1 %v260_v5  ;;  %v224_v41 = vld [vmem:[#allocation2 + $0x2c8] sm:$0xff]  ;;  %v229_v42 = vld [vmem:[#allocation2 + $0x2f0] sm:$0xff]  ;;  %v223_v43 = vld [vmem:[#allocation2 + $0x2c0] sm:$0xff] }
  0x32   :  { %386 = vmatprep.subr.mxu0 %v138_v4  ;;  %318 = vmatpush2.msra.mxu1 %v259_v7  ;;  %v226_v44 = vld [vmem:[#allocation2 + $0x2d8] sm:$0xff]  ;;  %v220_v45 = vld [vmem:[#allocation2 + $0x2a8] sm:$0xff]  ;;  %v225_v46 = vld [vmem:[#allocation2 + $0x2d0] sm:$0xff] }
  0x33   :  { %387 = vmatpush1.msra.mxu0 %v137_v6  ;;  %319 = vmatprep.subr.mxu1 %v256_v9  ;;  %v219_v47 = vld [vmem:[#allocation2 + $0x2a0] sm:$0xff]  ;;  %v222_v48 = vld [vmem:[#allocation2 + $0x2b8] sm:$0xff]  ;;  %v216_v49 = vld [vmem:[#allocation2 + $0x288] sm:$0xff]  ;;  %v48_v6 = vlaneseq }
  0x34   :  { %388 = vmatprep.subr.mxu0 %v262_v8  ;;  %320 = vmatpush2.msra.mxu1 %v255_v11  ;;  %v221_v50 = vld [vmem:[#allocation2 + $0x2b0] sm:$0xff]  ;;  %v215_v51 = vld [vmem:[#allocation2 + $0x280] sm:$0xff]  ;;  %v218_v52 = vld [vmem:[#allocation2 + $0x298] sm:$0xff] }
  0x35   :  { %389 = vmatpush2.msra.mxu0 %v261_v10  ;;  %321 = vmatprep.subr.mxu1 %v252_v13  ;;  %v217_v53 = vld [vmem:[#allocation2 + $0x290] sm:$0xff]  ;;  %v212_v54 = vld [vmem:[#allocation2 + $0x268] sm:$0xff]  ;;  %v214_v55 = vld [vmem:[#allocation2 + $0x278] sm:$0xff]  ;;  %v876_v7 = vshrl.u32 %v48_v6, 7 }
  0x36   :  { %390 = vmatprep.subr.mxu0 %v258_v12  ;;  %322 = vmatpush2.msra.mxu1 %v251_v15  ;;  %v211_v56 = vld [vmem:[#allocation2 + $0x260] sm:$0xff]  ;;  %v213_v57 = vld [vmem:[#allocation2 + $0x270] sm:$0xff]  ;;  %v208_v58 = vld [vmem:[#allocation2 + $0x248] sm:$0xff] }
  0x37   :  { %391 = vmatpush2.msra.mxu0 %v257_v14  ;;  %323 = vmatprep.subr.mxu1 %v248_v17  ;;  %v210_v59 = vld [vmem:[#allocation2 + $0x258] sm:$0xff]  ;;  %v207_v60 = vld [vmem:[#allocation2 + $0x240] sm:$0xff]  ;;  %v209_v61 = vld [vmem:[#allocation2 + $0x250] sm:$0xff]  ;;  %v50_v8 = vsub.s32 0, %v876_v7  ;;  %v54_v10 = vsub.s32 1, %v876_v7 }
  0x38   :  { %392 = vmatprep.subr.mxu0 %v254_v16  ;;  %324 = vmatpush2.msra.mxu1 %v247_v19  ;;  %v204_v62 = vld [vmem:[#allocation2 + $0x228] sm:$0xff]  ;;  %v206_v63 = vld [vmem:[#allocation2 + $0x238] sm:$0xff]  ;;  %v203_v0 = vld [vmem:[#allocation2 + $0x220] sm:$0xff] }
  0x39   :  { %393 = vmatpush2.msra.mxu0 %v253_v18  ;;  %325 = vmatprep.subr.mxu1 %v244_v21  ;;  %v205_v1 = vld [vmem:[#allocation2 + $0x230] sm:$0xff]  ;;  %v200_v2 = vld [vmem:[#allocation2 + $0x208] sm:$0xff]  ;;  %v202_v3 = vld [vmem:[#allocation2 + $0x218] sm:$0xff] }
  0x3a   :  { %394 = vmatprep.subr.mxu0 %v250_v20  ;;  %326 = vmatpush2.msra.mxu1 %v243_v23  ;;  %v199_v4 = vld [vmem:[#allocation2 + $0x200] sm:$0xff]  ;;  %v201_v5 = vld [vmem:[#allocation2 + $0x210] sm:$0xff]  ;;  %v481_v19 = vld [vmem:[%s1100_s5 + $0xf8] sm:$0xff] }
  0x3b   :  { %395 = vmatpush2.msra.mxu0 %v249_v22  ;;  %327 = vmatprep.subr.mxu1 %v240_v25  ;;  %v46_v9 = vld [vmem:[%s1097_s2] sm:$0x3]  ;;  %v465_v20 = vld [vmem:[%s1100_s5 + $0x78] sm:$0xff]  ;;  %v480_v22 = vld [vmem:[%s1100_s5 + $0xf0] sm:$0xff] }
  0x3c   :  { %396 = vmatprep.subr.mxu0 %v246_v24  ;;  %328 = vmatpush2.msra.mxu1 %v239_v27  ;;  %v51_v11 = vrot.slane %v46_v9, %v50_v8  ;;  %v55_v12 = vrot.slane %v46_v9, %v54_v10  ;;  %v513_v21 = vld [vmem:[%s1100_s5 + $0x1f8] sm:$0xff]  ;;  %v464_v24 = vld [vmem:[%s1100_s5 + $0x70] sm:$0xff]  ;;  %v486_v9 = vld [vmem:[%s1100_s5 + $0x120] sm:$0xff] }
  0x3d   :  { %397 = vmatpush2.msra.mxu0 %v245_v26  ;;  %329 = vmatprep.subr.mxu1 %v236_v29  ;;  %v497_v23 = vld [vmem:[%s1100_s5 + $0x178] sm:$0xff]  ;;  %v512_v25 = vld [vmem:[%s1100_s5 + $0x1f0] sm:$0xff]  ;;  %v479_v26 = vld [vmem:[%s1100_s5 + $0xe8] sm:$0xff] }
  0x3e   :  { %398 = vmatprep.subr.mxu0 %v242_v28  ;;  %330 = vmatpush2.msra.mxu1 %v235_v31  ;;  %v496_v27 = vld [vmem:[%s1100_s5 + $0x170] sm:$0xff]  ;;  %v463_v28 = vld [vmem:[%s1100_s5 + $0x68] sm:$0xff] }
  0x3f   :  { %399 = vmatpush2.msra.mxu0 %v241_v30  ;;  %331 = vmatprep.subr.mxu1 %v232_v33  ;;  %v511_v29 = vld [vmem:[%s1100_s5 + $0x1e8] sm:$0xff]  ;;  %v478_v30 = vld [vmem:[%s1100_s5 + $0xe0] sm:$0xff] }
  0x40   :  { %400 = vmatprep.subr.mxu0 %v238_v32  ;;  %332 = vmatpush2.msra.mxu1 %v231_v35  ;;  %v495_v31 = vld [vmem:[%s1100_s5 + $0x168] sm:$0xff]  ;;  %v510_v32 = vld [vmem:[%s1100_s5 + $0x1e0] sm:$0xff]  ;;  %v477_v35 = vld [vmem:[%s1100_s5 + $0xd8] sm:$0xff] }
  0x41   :  { %401 = vmatpush2.msra.mxu0 %v237_v34  ;;  %333 = vmatprep.subr.mxu1 %v228_v37  ;;  %v462_v33 = vld [vmem:[%s1100_s5 + $0x60] sm:$0xff]  ;;  %v461_v37 = vld [vmem:[%s1100_s5 + $0x58] sm:$0xff] }
  0x42   :  { %402 = vmatprep.subr.mxu0 %v234_v36  ;;  %334 = vmatpush2.msra.mxu1 %v227_v39  ;;  %v494_v34 = vld [vmem:[%s1100_s5 + $0x160] sm:$0xff]  ;;  %v509_v36 = vld [vmem:[%s1100_s5 + $0x1d8] sm:$0xff]  ;;  %v476_v39 = vld [vmem:[%s1100_s5 + $0xd0] sm:$0xff] }
  0x43   :  { %403 = vmatpush2.msra.mxu0 %v233_v38  ;;  %335 = vmatprep.subr.mxu1 %v224_v41  ;;  %v493_v38 = vld [vmem:[%s1100_s5 + $0x158] sm:$0xff]  ;;  %v460_v41 = vld [vmem:[%s1100_s5 + $0x50] sm:$0xff] }
  0x44   :  { %404 = vmatprep.subr.mxu0 %v230_v40  ;;  %336 = vmatpush2.msra.mxu1 %v223_v43  ;;  %v508_v40 = vld [vmem:[%s1100_s5 + $0x1d0] sm:$0xff]  ;;  %v475_v43 = vld [vmem:[%s1100_s5 + $0xc8] sm:$0xff] }
  0x45   :  { %405 = vmatpush2.msra.mxu0 %v229_v42  ;;  %337 = vmatprep.subr.mxu1 %v220_v45  ;;  %v492_v42 = vld [vmem:[%s1100_s5 + $0x150] sm:$0xff]  ;;  %v459_v45 = vld [vmem:[%s1100_s5 + $0x48] sm:$0xff] }
  0x46   :  { %406 = vmatprep.subr.mxu0 %v226_v44  ;;  %338 = vmatpush2.msra.mxu1 %v219_v47  ;;  %v507_v44 = vld [vmem:[%s1100_s5 + $0x1c8] sm:$0xff]  ;;  %v474_v47 = vld [vmem:[%s1100_s5 + $0xc0] sm:$0xff] }
  0x47   :  { %407 = vmatpush2.msra.mxu0 %v225_v46  ;;  %339 = vmatprep.subr.mxu1 %v216_v49  ;;  %v491_v46 = vld [vmem:[%s1100_s5 + $0x148] sm:$0xff]  ;;  %v458_v49 = vld [vmem:[%s1100_s5 + $0x40] sm:$0xff] }
  0x48   :  { %408 = vmatprep.subr.mxu0 %v222_v48  ;;  %340 = vmatpush2.msra.mxu1 %v215_v51  ;;  %v506_v48 = vld [vmem:[%s1100_s5 + $0x1c0] sm:$0xff]  ;;  %v473_v51 = vld [vmem:[%s1100_s5 + $0xb8] sm:$0xff] }
  0x49   :  { %409 = vmatpush2.msra.mxu0 %v221_v50  ;;  %341 = vmatprep.subr.mxu1 %v212_v54  ;;  %v490_v50 = vld [vmem:[%s1100_s5 + $0x140] sm:$0xff]  ;;  %v489_v54 = vld [vmem:[%s1100_s5 + $0x138] sm:$0xff] }
  0x4a   :  { %410 = vmatprep.subr.mxu0 %v218_v52  ;;  %342 = vmatpush2.msra.mxu1 %v211_v56  ;;  %v505_v52 = vld [vmem:[%s1100_s5 + $0x1b8] sm:$0xff]  ;;  %v504_v56 = vld [vmem:[%s1100_s5 + $0x1b0] sm:$0xff] }
  0x4b   :  { %411 = vmatpush2.msra.mxu0 %v217_v53  ;;  %343 = vmatprep.subr.mxu1 %v208_v58  ;;  %v457_v53 = vld [vmem:[%s1100_s5 + $0x38] sm:$0xff]  ;;  %v488_v58 = vld [vmem:[%s1100_s5 + $0x130] sm:$0xff] }
  0x4c   :  { %412 = vmatprep.subr.mxu0 %v214_v55  ;;  %344 = vmatpush2.msra.mxu1 %v207_v60  ;;  %v472_v55 = vld [vmem:[%s1100_s5 + $0xb0] sm:$0xff]  ;;  %v503_v60 = vld [vmem:[%s1100_s5 + $0x1a8] sm:$0xff] }
  0x4d   :  { %413 = vmatpush2.msra.mxu0 %v213_v57  ;;  %345 = vmatprep.subr.mxu1 %v204_v62  ;;  %v456_v57 = vld [vmem:[%s1100_s5 + $0x30] sm:$0xff]  ;;  %v487_v62 = vld [vmem:[%s1100_s5 + $0x128] sm:$0xff] }
  0x4e   :  { %414 = vmatprep.subr.mxu0 %v210_v59  ;;  %346 = vmatpush2.msra.mxu1 %v203_v0  ;;  %v471_v59 = vld [vmem:[%s1100_s5 + $0xa8] sm:$0xff]  ;;  %v275_v0 = vsub.s32 2, %v876_v7 }
  0x4f   :  { %415 = vmatpush2.msra.mxu0 %v209_v61  ;;  %347 = vmatprep.subr.mxu1 %v200_v2  ;;  %v455_v61 = vld [vmem:[%s1100_s5 + $0x28] sm:$0xff]  ;;  %v279_v2 = vsub.s32 3, %v876_v7  ;;  %v466_v7 = vld [vmem:[%s1100_s5 + $0x80] sm:$0xff] }
  0x50   :  { %416 = vmatprep.subr.mxu0 %v206_v63  ;;  %348 = vmatpush2.msra.mxu1 %v199_v4  ;;  %v470_v63 = vld [vmem:[%s1100_s5 + $0xa0] sm:$0xff] }
  0x51   :  { %417 = vmatpush2.msra.mxu0 %v205_v1  ;;  %681 = vmatprep.subr.mxu1 %v481_v19  ;;  %v263_v1 = vld [vmem:[%s1099_s4] sm:$0xf]  ;;  %v500_v19 = vld [vmem:[%s1100_s5 + $0x190] sm:$0xff] }
  0x52   :  { %418 = vmatprep.subr.mxu0 %v202_v3  ;;  %v454_v3 = vld [vmem:[%s1100_s5 + $0x20] sm:$0xff] }
  0x53   :  { %419 = vmatpush2.msra.mxu0 %v201_v5  ;;  %v502_v4 = vld [vmem:[%s1100_s5 + $0x1a0] sm:$0xff]  ;;  %v469_v5 = vld [vmem:[%s1100_s5 + $0x98] sm:$0xff] }
  0x54   :  { %716 = vmatprep.subr.mxu0 %v513_v21 }
  0xd3   :  { %v128_v13 = vpop.f32.mrf.mxu0 }
  0xd4   :  { %v129_v14 = vadd.f32 %v128_v13, %v51_v11  ;;  %v453_v11 = vld [vmem:[%s1100_s5 + $0x18] sm:$0xff] }
  0xd5   :  { %v130_v15 = vpop.f32.mrf.mxu0  ;;  %v501_v13 = vld [vmem:[%s1100_s5 + $0x198] sm:$0xff] }
  0xd6   :  { %v131_v16 = vadd.f32 %v130_v15, %v55_v12  ;;  %v133_v18 = vmax.f32 %v129_v14, 0.0  ;;  %v276_v12 = vrot.slane %v263_v1, %v275_v0  ;;  %v468_v14 = vld [vmem:[%s1100_s5 + $0x90] sm:$0xff]  ;;  %v485_v15 = vld [vmem:[%s1100_s5 + $0x118] sm:$0xff] }
  0xd8   :  { %v134_v17 = vmax.f32 %v131_v16, 0.0  ;;  %v272_v16 = vrot.slane %v263_v1, %v54_v10  ;;  %v484_v10 = vld [vmem:[%s1100_s5 + $0x110] sm:$0xff] }
  0xda   :  { %349 = vmatprep.mubr.f32.mxu1 %v134_v17  ;;  %420 = vmatprep.mubr.f32.mxu0 %v134_v17  ;;  %v280_v17 = vrot.slane %v263_v1, %v279_v2 }
  0xdb   :  { %350 = vmatmul.mubr.f32.vlgmr.msra.gmra.mxu1 %v133_v18  ;;  %421 = vmatmul.mubr.f32.vlgmr.msra.gmra.mxu0 %v133_v18  ;;  %v452_v18 = vld [vmem:[%s1100_s5 + $0x10] sm:$0xff] }
  0xdc   :  { %682 = vmatpush3.msra.mxu1 %v465_v20  ;;  %717 = vmatpush3.msra.mxu0 %v497_v23  ;;  %v268_v23 = vrot.slane %v263_v1, %v50_v8  ;;  %v483_v8 = vld [vmem:[%s1100_s5 + $0x108] sm:$0xff] }
  0xdd   :  { %683 = vmatprep.subr.mxu1 %v480_v22  ;;  %718 = vmatprep.subr.mxu0 %v512_v25  ;;  %v467_v22 = vld [vmem:[%s1100_s5 + $0x88] sm:$0xff] }
  0xde   :  { %684 = vmatpush3.msra.mxu1 %v464_v24  ;;  %719 = vmatpush3.msra.mxu0 %v496_v27  ;;  %v451_v25 = vld [vmem:[%s1100_s5 + $0x8] sm:$0xff] }
  0xdf   :  { %685 = vmatprep.subr.mxu1 %v479_v26  ;;  %720 = vmatprep.subr.mxu0 %v511_v29  ;;  %v499_v26 = vld [vmem:[%s1100_s5 + $0x188] sm:$0xff] }
  0xe0   :  { %686 = vmatpush3.msra.mxu1 %v463_v28  ;;  %721 = vmatpush3.msra.mxu0 %v495_v31  ;;  %v450_v31 = vld [vmem:[%s1100_s5] sm:$0xff] }
  0xe1   :  { %687 = vmatprep.subr.mxu1 %v478_v30  ;;  %722 = vmatprep.subr.mxu0 %v510_v32  ;;  %v498_v32 = vld [vmem:[%s1100_s5 + $0x180] sm:$0xff] }
  0xe2   :  { %688 = vmatpush3.msra.mxu1 %v462_v33  ;;  %723 = vmatpush3.msra.mxu0 %v494_v34  ;;  %v482_v33 = vld [vmem:[%s1100_s5 + $0x100] sm:$0xff] }
  0xe3   :  { %689 = vmatprep.subr.mxu1 %v477_v35  ;;  %724 = vmatprep.subr.mxu0 %v509_v36 }
  0xe4   :  { %690 = vmatpush3.msra.mxu1 %v461_v37  ;;  %725 = vmatpush3.msra.mxu0 %v493_v38 }
  0xe5   :  { %691 = vmatprep.subr.mxu1 %v476_v39  ;;  %726 = vmatprep.subr.mxu0 %v508_v40 }
  0xe6   :  { %692 = vmatpush3.msra.mxu1 %v460_v41  ;;  %727 = vmatpush3.msra.mxu0 %v492_v42  ;;  %v440_v41 = vand.u32 127, %v48_v6 }
  0xe7   :  { %693 = vmatprep.subr.mxu1 %v475_v43  ;;  %728 = vmatprep.subr.mxu0 %v507_v44 }
  0xe8   :  { %694 = vmatpush3.msra.mxu1 %v459_v45  ;;  %729 = vmatpush3.msra.mxu0 %v491_v46  ;;  %vm441_vm1 = vcmp.lt.s32.totalorder %v440_v41, 96 }
  0xe9   :  { %695 = vmatprep.subr.mxu1 %v474_v47  ;;  %730 = vmatprep.subr.mxu0 %v506_v48 }
  0xea   :  { %696 = vmatpush3.msra.mxu1 %v458_v49  ;;  %731 = vmatpush3.msra.mxu0 %v490_v50 }
  0xeb   :  { %697 = vmatprep.subr.mxu1 %v473_v51  ;;  %732 = vmatprep.subr.mxu0 %v505_v52 }
  0xec   :  { %698 = vmatpush3.msra.mxu1 %v457_v53  ;;  %733 = vmatpush3.msra.mxu0 %v489_v54 }
  0xed   :  { %699 = vmatprep.subr.mxu1 %v472_v55  ;;  %734 = vmatprep.subr.mxu0 %v504_v56 }
  0xee   :  { %700 = vmatpush3.msra.mxu1 %v456_v57  ;;  %735 = vmatpush3.msra.mxu0 %v488_v58  ;;  %v680_v57 = vld [vmem:[%s1101_s6] ss:$0 sm:$0xff] }
  0xef   :  { %701 = vmatprep.subr.mxu1 %v471_v59  ;;  %736 = vmatprep.subr.mxu0 %v503_v60 }
  0xf0   :  { %702 = vmatpush3.msra.mxu1 %v455_v61  ;;  %737 = vmatpush3.msra.mxu0 %v487_v62 }
  0xf1   :  { %703 = vmatprep.subr.mxu1 %v470_v63  ;;  %738 = vmatprep.subr.mxu0 %v502_v4 }
  0xf2   :  { %704 = vmatpush3.msra.mxu1 %v454_v3  ;;  %739 = vmatpush3.msra.mxu0 %v486_v9 }
  0xf3   :  { %705 = vmatprep.subr.mxu1 %v469_v5  ;;  %740 = vmatprep.subr.mxu0 %v501_v13 }
  0xf4   :  { %706 = vmatpush3.msra.mxu1 %v453_v11  ;;  %741 = vmatpush3.msra.mxu0 %v485_v15 }
  0xf5   :  { %707 = vmatprep.subr.mxu1 %v468_v14  ;;  %742 = vmatprep.subr.mxu0 %v500_v19 }
  0xf6   :  { %708 = vmatpush3.msra.mxu1 %v452_v18  ;;  %743 = vmatpush3.msra.mxu0 %v484_v10 }
  0xf7   :  { %709 = vmatprep.subr.mxu1 %v467_v22  ;;  %744 = vmatprep.subr.mxu0 %v499_v26 }
  0xf8   :  { %710 = vmatpush3.msra.mxu1 %v451_v25  ;;  %745 = vmatpush3.msra.mxu0 %v483_v8 }
  0xf9   :  { %711 = vmatprep.subr.mxu1 %v466_v7  ;;  %746 = vmatprep.subr.mxu0 %v498_v32 }
  0xfa   :  { %712 = vmatpush3.msra.mxu1 %v450_v31  ;;  %747 = vmatpush3.msra.mxu0 %v482_v33 }
 0x19b   :  { %v351_v20 = vpop.f32.mrf.mxu1  ;;  %v422_v21 = vpop.f32.mrf.mxu0 }
 0x19c   :  { %v423_v24 = vadd.f32 %v422_v21, %v276_v12  ;;  %v352_v34 = vadd.f32 %v351_v20, %v268_v23 }
 0x19d   :  { %v353_v27 = vpop.f32.mrf.mxu1  ;;  %v424_v28 = vpop.f32.mrf.mxu0 }
 0x19e   :  { %v354_v29 = vadd.f32 %v353_v27, %v272_v16  ;;  %v425_v30 = vadd.f32 %v424_v28, %v280_v17  ;;  %v429_v35 = vmax.f32 %v423_v24, 0.0  ;;  %v427_v39 = vmax.f32 %v352_v34, 0.0 }
 0x1a0   :  { %v428_v36 = vmax.f32 %v354_v29, 0.0  ;;  %v430_v37 = vmax.f32 %v425_v30, 0.0 }
 0x1a2   :  { %v757_v38 = vpack.i.bf16 %v429_v35, %v428_v36  ;;  %v762_v40 = vpack.i.bf16 %v430_v37, %v427_v39 }
 0x1a4   :  { %758 = vrot.lane.b32.xlu0 %v757_v38, %s815_s13 }
 0x1a8   :  { %763 = vrot.lane.b32.xlu0 %v762_v40, %s815_s13 }
 0x216   :  { %v759_v42 = vpop.permute.xlu0 %758 }
 0x217   :  { %v761_v43 = vunpack.i.h.bf16 %v759_v42  ;;  %v760_v44 = vunpack.i.l.bf16 %v759_v42 }
 0x219   :  { %v443_v45 = vsel %vm441_vm1, %v760_v44, %v761_v43 }
 0x21a   :  { %v764_v46 = vpop.permute.xlu0 %763  ;;  %v447_v47 = vmax.f32 %v428_v36, %v443_v45 }
 0x21b   :  { %v766_v48 = vunpack.i.h.bf16 %v764_v46  ;;  %v765_v49 = vunpack.i.l.bf16 %v764_v46 }
 0x21c   :  { %585 = vmatprep.mubr.f32.mxu1 %v447_v47 }
 0x21d   :  { %v442_v50 = vsel %vm441_vm1, %v761_v43, %v766_v48  ;;  %v444_v51 = vsel %vm441_vm1, %v765_v49, %v760_v44  ;;  %v445_v52 = vsel %vm441_vm1, %v766_v48, %v765_v49 }
 0x21e   :  { %v448_v53 = vmax.f32 %v429_v35, %v442_v50  ;;  %v446_v54 = vmax.f32 %v427_v39, %v444_v51  ;;  %v449_v55 = vmax.f32 %v430_v37, %v445_v52 }
 0x220   :  { %586 = vmatmul.mubr.f32.vlgmr.msra.gmra.mxu1 %v446_v54  ;;  %655 = vmatprep.mubr.f32.mxu0 %v449_v55 }
 0x221   :  { %656 = vmatmul.mubr.f32.vlgmr.msra.gmra.mxu0 %v448_v53 }
 0x2e0   :  { %v713_v6 = vpop.f32.mrf.mxu1 }
 0x2e1   :  { %v748_v56 = vpop.f32.mrf.mxu0 }
 0x2e2   :  { %v714_v58 = vpop.f32.mrf.mxu1 }
 0x2e3   :  { %v715_v59 = vadd.f32 %v714_v58, %v713_v6  ;;  %v749_v60 = vpop.f32.mrf.mxu0 }
 0x2e4   :  { %v750_v61 = vadd.f32 %v749_v60, %v748_v56 }
 0x2e5   :  { %v588_v62 = vadd.f32 %v715_v59, %v680_v57 }
 0x2e7   :  { %v658_v63 = vadd.f32 %v750_v61, %v588_v62 }
 0x2e9   :  { %v661_v0 = vmax.f32 %v658_v63, 0.0 }
 0x2eb   :  { %663 = vst.msk [vmem:[#allocation5] sm:$0x3] %vm662_vm2, %v661_v0 }
 0x2ec   :  { %798 = shalt.err (!%p795_p9)
}
 0x2ed   :  { %673 = dma.vmem_to_hbm [thread:$0]  %s671_s3, 32, %s1102_s7, [#allocation4]  }
 0x2ee   :  { %809 = dma.done.wait [#allocation4], 32  }
 0x2ef   :  { %810 = vsyncadd [#allocation4], 4294967264 }
 0x2f0   :  { %677 = vsyncpa [#allocation3], 1 }
 0x2f1   :  { %678 = vsyncpa [#allocation4], 1 }

</bundles_post_ra>
